<compile_context>
chip_gen: v7x
topology: tpu7x:2x2x1
jax: 0.10.0
libtpu: 0.0.40
codegen_flags: <defaults>
</compile_context>

<pallas_src>
import jax
import jax.numpy as jnp
from jax import lax
from jax.experimental import pallas as pl
from jax.experimental.pallas import tpu as pltpu

_LANES = 128                         # vreg lane width
_SUBLANES = 8                        # f32 vreg sublane count
_MAX_TILE_ROWS = 2048                # 2048 x 128 f32 = 1 MiB per input tile
_PALLAS_MIN_N = _MAX_TILE_ROWS * _LANES   # below this, fused XLA wins


def _softplus_neg(diff):
    # Numerically stable BCE-with-logits against target=1:
    #   softplus(-x) == max(x, 0) - x + log1p(exp(-|x|))
    return jnp.maximum(diff, 0.0) - diff + jnp.log1p(jnp.exp(-jnp.abs(diff)))


def _round_up(x: int, m: int) -> int:
    return ((x + m - 1) // m) * m


def _sublane_multiple(dtype) -> int:
    # f32 -> 8, bf16/f16 -> 16, 1-byte dtypes -> 32 (packed sublane granularity).
    return max(_SUBLANES, 32 // jnp.dtype(dtype).itemsize)


def _make_prl_kernel(tile_rows: int, rows: int):
    """Builds the per-tile kernel.  grid = (n_tiles,), reduction axis.

    pos_ref / neg_ref: (tile_rows, 128) tiles of the scores (native dtype).
    out_ref:           (8, 128) f32 partial-sum slab (resident across the grid).
    acc_ref:           (tile_rows, 128) f32 VMEM accumulator scratch.
    """
    ragged = (rows % tile_rows) != 0  # static: only the last tile can be partial

    def kernel(pos_ref, neg_ref, out_ref, acc_ref):
        t = pl.program_id(0)

        @pl.when(t == 0)
        def _init():
            acc_ref[...] = jnp.zeros_like(acc_ref)

        # Upcast after the (possibly bf16) DMA; all math in f32 on the VPU/EUP.
        diff = pos_ref[...].astype(jnp.float32) - neg_ref[...].astype(jnp.float32)
        sp = _softplus_neg(diff)

        if ragged:
            # Mask rows beyond the true extent (OOB block contents are undefined).
            valid = rows - t * tile_rows                      # scalar, >= tile_rows
            row_id = lax.broadcasted_iota(jnp.int32, (tile_rows, _LANES), 0)
            sp = jnp.where(row_id < valid, sp, 0.0)

        # Pure VPU/EUP work in the loop body; no cross-lane reduce here.
        acc_ref[...] += sp

        @pl.when(t == pl.num_programs(0) - 1)
        def _finalize():
            # Vreg-aligned reduction over the sublane-tiled axis only (VPU adds),
            # written as a full-lane (8, 128) slab -> unmasked stores.
            folded = acc_ref[...].reshape(tile_rows // _SUBLANES, _SUBLANES, _LANES)
            out_ref[...] = jnp.sum(folded, axis=0)

    return kernel


def pairwise_ranking_loss(s_pos: jax.Array, s_neg: jax.Array, *,
                          force_pallas: bool = False) -> jax.Array:
    """JAX/Pallas equivalent of PairwiseRankingLoss (reduction='mean').

    s_pos, s_neg: shape (N,) or (N, 1) score arrays.  Returns scalar f32 loss.
    """
    pos = jnp.asarray(s_pos).reshape(-1)
    neg = jnp.asarray(s_neg).reshape(-1)
    assert pos.shape == neg.shape, (pos.shape, neg.shape)
    if not jnp.issubdtype(pos.dtype, jnp.floating):
        pos = pos.astype(jnp.float32)
    if not jnp.issubdtype(neg.dtype, jnp.floating):
        neg = neg.astype(jnp.float32)

    n = pos.shape[0]
    n_main = (n // _LANES) * _LANES   # lane-aligned prefix handled by the kernel

    if (n < _PALLAS_MIN_N and not force_pallas) or n_main == 0:
        # Small / tiny batch: launch + DMA-setup overhead beats any kernel gain;
        # the trivially-fusable XLA expression already hits the HBM roofline.
        diff = pos.astype(jnp.float32) - neg.astype(jnp.float32)
        return jnp.mean(_softplus_neg(diff))

    # ---- lane-dense layout + tile sizing -----------------------------------
    rows = n_main // _LANES
    sub_mult = max(_sublane_multiple(pos.dtype), _sublane_multiple(neg.dtype))
    tile_rows = min(_MAX_TILE_ROWS, _round_up(rows, sub_mult))
    n_tiles = pl.cdiv(rows, tile_rows)

    # Free reshape when n % 128 == 0; a single prefix-slice copy otherwise
    # (the <128-element remainder is handled below in fused XLA).
    if n_main == n:
        pos2 = pos.reshape(rows, _LANES)
        neg2 = neg.reshape(rows, _LANES)
    else:
        pos2 = pos[:n_main].reshape(rows, _LANES)
        neg2 = neg[:n_main].reshape(rows, _LANES)

    in_spec = pl.BlockSpec((tile_rows, _LANES), lambda t: (t, 0))

    partial = pl.pallas_call(
        _make_prl_kernel(tile_rows, rows),
        out_shape=jax.ShapeDtypeStruct((_SUBLANES, _LANES), jnp.float32),
        grid_spec=pltpu.PrefetchScalarGridSpec(
            num_scalar_prefetch=0,
            grid=(n_tiles,),
            in_specs=[in_spec, in_spec],
            out_specs=pl.BlockSpec((_SUBLANES, _LANES), lambda t: (0, 0)),
            scratch_shapes=[pltpu.VMEM((tile_rows, _LANES), jnp.float32)],
        ),
        compiler_params=pltpu.CompilerParams(
            dimension_semantics=("arbitrary",)),
    )(pos2, neg2)

    total = jnp.sum(partial)

    if n_main != n:
        # <128-element lane tail: fused XLA, negligible traffic.
        tail = _softplus_neg(pos[n_main:].astype(jnp.float32)
                             - neg[n_main:].astype(jnp.float32))
        total = total + jnp.sum(tail)

    # Divide by the TRUE N (mean reduction), as a single scalar op.
    return total / jnp.float32(n)


def _reference_loss(s_pos, s_neg):
    diff = (jnp.asarray(s_pos, jnp.float32) - jnp.asarray(s_neg, jnp.float32)).reshape(-1)
    return jnp.mean(_softplus_neg(diff))


if __name__ == "__main__":
    key = jax.random.PRNGKey(0)
    ks = jax.random.split(key, 8)

    # Case 1: tiny (N, 1) scores like the original module usage -> fused XLA path.
    p1 = jax.random.normal(ks[0], (8, 1), dtype=jnp.float32)
    n1 = jax.random.normal(ks[1], (8, 1), dtype=jnp.float32)
    out1 = jax.block_until_ready(pairwise_ranking_loss(p1, n1))
    ref1 = jax.block_until_ready(_reference_loss(p1, n1))
    assert jnp.allclose(out1, ref1, rtol=1e-5, atol=1e-6), (out1, ref1)

    # Case 2: N multiple of 128 through the Pallas kernel (free reshape, no mask).
    p2 = jax.random.normal(ks[2], (4096, 1), dtype=jnp.float32)
    n2 = jax.random.normal(ks[3], (4096, 1), dtype=jnp.float32)
    out2 = jax.block_until_ready(pairwise_ranking_loss(p2, n2, force_pallas=True))
    ref2 = jax.block_until_ready(_reference_loss(p2, n2))
    assert jnp.allclose(out2, ref2, rtol=1e-5, atol=1e-6), (out2, ref2)

    # Case 3: ragged N -> partial last row-block masked in-kernel + wrapper tail.
    p3 = jax.random.normal(ks[4], (5000,), dtype=jnp.float32)
    n3 = jax.random.normal(ks[5], (5000,), dtype=jnp.float32)
    out3 = jax.block_until_ready(pairwise_ranking_loss(p3, n3, force_pallas=True))
    ref3 = jax.block_until_ready(_reference_loss(p3, n3))
    assert jnp.allclose(out3, ref3, rtol=1e-5, atol=1e-6), (out3, ref3)

    # Case 4: bf16 scores DMA'd natively, upcast to f32 inside the kernel.
    p4 = jax.random.normal(ks[6], (4096,), dtype=jnp.bfloat16)
    n4 = jax.random.normal(ks[7], (4096,), dtype=jnp.bfloat16)
    out4 = jax.block_until_ready(pairwise_ranking_loss(p4, n4, force_pallas=True))
    ref4 = jax.block_until_ready(_reference_loss(p4, n4))
    assert jnp.allclose(out4, ref4, rtol=1e-5, atol=1e-6), (out4, ref4)

    print("KERNEL_OK")
</pallas_src>

<mosaic_0001>
module attributes {stable_mosaic.version = 11 : i64} {
  func.func @kernel(%arg0: i32, %arg1: memref<32x128xf32, #tpu.memory_space<vmem>>, %arg2: memref<32x128xf32, #tpu.memory_space<vmem>>, %arg3: memref<8x128xf32, #tpu.memory_space<vmem>>, %arg4: memref<32x128xf32, #tpu.memory_space<vmem>>) attributes {dimension_semantics = [#tpu.dimension_semantics<arbitrary>], iteration_bounds = array<i64: 1>, scalar_prefetch = 0 : i64, scratch_operands = 1 : i64, tpu.core_type = #tpu.core_type<tc>, window_params = [{transform_indices = @transform_0, window_bounds = array<i64: 32, 128>}, {transform_indices = @transform_1, window_bounds = array<i64: 32, 128>}, {pipeline_mode = #tpu.pipeline_mode<synchronous>, transform_indices = @transform_2, window_bounds = array<i64: 8, 128>}]} {
    %c0_i32 = arith.constant 0 : i32
    %0 = arith.cmpi eq, %arg0, %c0_i32 : i32
    %1 = arith.extui %0 : i1 to i32
    %c0_i32_0 = arith.constant 0 : i32
    %2 = arith.cmpi ne, %1, %c0_i32_0 : i32
    scf.if %2 {
      %cst_11 = arith.constant 0.000000e+00 : f32
      %21 = vector.broadcast %cst_11 : f32 to vector<32x128xf32>
      %c0_12 = arith.constant 0 : index
      %c0_13 = arith.constant 0 : index
      %22 = vector.load %arg4[%c0_12, %c0_13] : memref<32x128xf32, #tpu.memory_space<vmem>>, vector<32x128xf32>
      tpu.vector_store %arg4[%c0_12, %c0_13], %21 {strides = array<i32>} : memref<32x128xf32, #tpu.memory_space<vmem>>, vector<32x128xf32>,
    } else {
    }
    %c0 = arith.constant 0 : index
    %c0_1 = arith.constant 0 : index
    %3 = vector.load %arg1[%c0, %c0_1] : memref<32x128xf32, #tpu.memory_space<vmem>>, vector<32x128xf32>
    %c0_2 = arith.constant 0 : index
    %c0_3 = arith.constant 0 : index
    %4 = vector.load %arg2[%c0_2, %c0_3] : memref<32x128xf32, #tpu.memory_space<vmem>>, vector<32x128xf32>
    %5 = arith.subf %3, %4 : vector<32x128xf32>
    %cst = arith.constant 0.000000e+00 : f32
    %6 = vector.broadcast %cst : f32 to vector<32x128xf32>
    %7 = arith.maximumf %5, %6 : vector<32x128xf32>
    %8 = arith.subf %7, %5 : vector<32x128xf32>
    %9 = math.absf %5 : vector<32x128xf32>
    %cst_4 = arith.constant 0.000000e+00 : f32
    %10 = vector.broadcast %cst_4 : f32 to vector<32x128xf32>
    %11 = arith.subf %10, %9 : vector<32x128xf32>
    %12 = math.exp %11 : vector<32x128xf32>
    %13 = math.log1p %12 : vector<32x128xf32>
    %14 = arith.addf %8, %13 : vector<32x128xf32>
    %c0_5 = arith.constant 0 : index
    %c0_6 = arith.constant 0 : index
    %15 = vector.load %arg4[%c0_5, %c0_6] : memref<32x128xf32, #tpu.memory_space<vmem>>, vector<32x128xf32>
    %16 = arith.addf %15, %14 : vector<32x128xf32>
    %c0_7 = arith.constant 0 : index
    %c0_8 = arith.constant 0 : index
    %17 = vector.load %arg4[%c0_7, %c0_8] : memref<32x128xf32, #tpu.memory_space<vmem>>, vector<32x128xf32>
    tpu.vector_store %arg4[%c0_7, %c0_8], %16 {strides = array<i32>} : memref<32x128xf32, #tpu.memory_space<vmem>>, vector<32x128xf32>,
    %c0_i32_9 = arith.constant 0 : i32
    %18 = arith.cmpi eq, %arg0, %c0_i32_9 : i32
    %19 = arith.extui %18 : i1 to i32
    %c0_i32_10 = arith.constant 0 : i32
    %20 = arith.cmpi ne, %19, %c0_i32_10 : i32
    scf.if %20 {
      %c0_11 = arith.constant 0 : index
      %c0_12 = arith.constant 0 : index
      %21 = vector.load %arg4[%c0_11, %c0_12] : memref<32x128xf32, #tpu.memory_space<vmem>>, vector<32x128xf32>
      %22 = vector.shape_cast %21 : vector<32x128xf32> to vector<4x8x128xf32>
      %cst_13 = arith.constant dense<0.000000e+00> : vector<8x128xf32>
      %23 = vector.multi_reduction <add>, %22, %cst_13 [0] : vector<4x8x128xf32> to vector<8x128xf32>
      %c0_14 = arith.constant 0 : index
      %c0_15 = arith.constant 0 : index
      %24 = vector.load %arg3[%c0_14, %c0_15] : memref<8x128xf32, #tpu.memory_space<vmem>>, vector<8x128xf32>
      tpu.vector_store %arg3[%c0_14, %c0_15], %23 {strides = array<i32>} : memref<8x128xf32, #tpu.memory_space<vmem>>, vector<8x128xf32>,
    } else {
    }
    return
  }
  func.func @transform_0(%arg0: i32) -> (i32, i32) {
    %c0_i32 = arith.constant 0 : i32
    %c0_i32_0 = arith.constant 0 : i32
    return %arg0, %c0_i32 : i32, i32
  }
  func.func @transform_1(%arg0: i32) -> (i32, i32) {
    %c0_i32 = arith.constant 0 : i32
    %c0_i32_0 = arith.constant 0 : i32
    return %arg0, %c0_i32 : i32, i32
  }
  func.func @transform_2(%arg0: i32) -> (i32, i32) {
    %c0_i32 = arith.constant 0 : i32
    %c0_i32_0 = arith.constant 0 : i32
    %c0_i32_1 = arith.constant 0 : i32
    return %c0_i32, %c0_i32_0 : i32, i32
  }
}

</mosaic_0001>

<bundles_post_ra>
// kernel: tpu_custom_call.1
= control target key start
LH: loop header
LB: loop body
LE: loop exit
PB: predicated region body
PF: predicated region fallthrough
CT: control target
= control target key end

     0   :  { %7 = vsyncpa [#allocation4], 0  ;;  %s329_s0 = inlined_call_operand.hbm [shape: f32[32,128], index: 0, kind: input, shape index: {}]   ;;  %s330_s1 = inlined_call_operand.hbm [shape: f32[32,128], index: 1, kind: input, shape index: {}]   ;;  %s331_s2 = inlined_call_operand.hbm [shape: f32[8,128], index: 2, kind: output, shape index: {}]  }
   0x1   :  { %8 = vsyncpa [#allocation7], 0 }
   0x2   :  { %9 = vsyncpa [#allocation5], 0  ;;  %s256_s9 = smov [#allocation3]   ;;  %s184_s13 = scalar_lea.hbm %s329_s0, 512 }
   0x3   :  { %s15_s10 = sshll.u32 %s256_s9, 4  ;;  %p185_p0 = scmp.ne.s32.totalorder %s329_s0, %s184_s13  ;;  %s16_s10 = int_to_ptr.vmem [resolvable:$true] %s15_s10 }
   0x4   :  { %p188_p1 = scmp.lt.u32.totalorder %s184_s13, %s329_s0 }
   0x6   :  { %p190_p2 = pnand %p188_p1, %p185_p0 }
   0x8   :  { %193 = shalt.err (!%p190_p2)
}
   0x9   :  { %s194_s18 = scalar_lea.vmem %s16_s10, 512  ;;  %p199_p4 = scmp.lt.s32.totalorder %s16_s10, %s16_s10 }
   0xa   :  { %p195_p3 = scmp.ne.s32.totalorder %s16_s10, %s194_s18  ;;  %p200_p5 = scmp.lt.s32.totalorder %s194_s18, %s194_s18 }
   0xc   :  { %p201_p6 = por %p200_p5, %p199_p4 }
   0xe   :  { %p202_p7 = pnand %p201_p6, %p195_p3 }
  0x10   :  { %205 = shalt.err (!%p202_p7)
}
  0x11   :  { %s257_s19 = smov 128   ;;  %s258_s20 = smov 8  }
  0x12   :  { %21 = dma.hbm_to_vmem [thread:$0]  %s329_s0, 512, %s16_s10, [#allocation4], %s257_s19, %s257_s19, %s258_s20  }
  0x13   :  { %s259_s23 = smov [#allocation6]   ;;  %s206_s27 = scalar_lea.hbm %s330_s1, 512 }
  0x14   :  { %s27_s24 = sshll.u32 %s259_s23, 4  ;;  %p207_p8 = scmp.ne.s32.totalorder %s330_s1, %s206_s27  ;;  %s28_s24 = int_to_ptr.vmem [resolvable:$true] %s27_s24 }
  0x15   :  { %p210_p9 = scmp.lt.u32.totalorder %s206_s27, %s330_s1 }
  0x17   :  { %p212_p10 = pnand %p210_p9, %p207_p8 }
  0x19   :  { %215 = shalt.err (!%p212_p10)
}
  0x1a   :  { %s216_s4 = scalar_lea.vmem %s28_s24, 512  ;;  %p221_p12 = scmp.lt.s32.totalorder %s28_s24, %s28_s24 }
  0x1b   :  { %p217_p11 = scmp.ne.s32.totalorder %s28_s24, %s216_s4  ;;  %p222_p13 = scmp.lt.s32.totalorder %s216_s4, %s216_s4 }
  0x1d   :  { %p223_p0 = por %p222_p13, %p221_p12 }
  0x1f   :  { %p224_p1 = pnand %p223_p0, %p217_p11 }
  0x21   :  { %227 = shalt.err (!%p224_p1)
}
  0x22   :  { %33 = dma.hbm_to_vmem [thread:$0]  %s330_s1, 512, %s28_s24, [#allocation7], %s257_s19, %s257_s19, %s258_s20  }
  0x23   :  { %250 = dma.done.wait [#allocation4], 512  }
  0x24   :  { %251 = vsyncadd [#allocation4], 4294966784 }
  0x25   :  { %252 = dma.done.wait [#allocation7], 512  }
  0x26   :  { %253 = vsyncadd [#allocation7], 4294966784  ;;  %v48_v0 = vld [vmem:[#allocation3] sm:$0xff]  ;;  %v49_v1 = vld [vmem:[#allocation3 + $0x8] sm:$0xff]  ;;  %s260_s1 = smov [#allocation8]  }
  0x27   :  { %v50_v2 = vld [vmem:[#allocation3 + $0x10] sm:$0xff]  ;;  %v51_v3 = vld [vmem:[#allocation3 + $0x18] sm:$0xff]  ;;  %v52_v4 = vld [vmem:[#allocation6] sm:$0xff]  ;;  %s153_s6 = sshll.u32 %s260_s1, 4  ;;  %s154_s6 = int_to_ptr.vmem [resolvable:$true] %s153_s6 }
  0x28   :  { %v53_v5 = vld [vmem:[#allocation6 + $0x8] sm:$0xff]  ;;  %v54_v6 = vld [vmem:[#allocation6 + $0x10] sm:$0xff]  ;;  %v55_v7 = vld [vmem:[#allocation6 + $0x18] sm:$0xff]  ;;  %v56_v8 = vsub.f32 %v48_v0, %v52_v4  ;;  %s228_s7 = scalar_lea.vmem %s154_s6, 128  ;;  %p233_p3 = scmp.lt.s32.totalorder %s154_s6, %s154_s6 }
  0x29   :  { %v57_v9 = vsub.f32 %v49_v1, %v53_v5  ;;  %v58_v10 = vsub.f32 %v50_v2, %v54_v6  ;;  %v300_v11 = vsub.f32 %v51_v3, %v55_v7  ;;  %p229_p2 = scmp.ne.s32.totalorder %s154_s6, %s228_s7  ;;  %p234_p4 = scmp.lt.s32.totalorder %s228_s7, %s228_s7 }
  0x2a   :  { %v68_v12 = vand.u32 2147483647, %v56_v8  ;;  %v60_v37 = vmax.f32 %v56_v8, 0.0 }
  0x2b   :  { %v69_v13 = vand.u32 2147483647, %v57_v9  ;;  %v70_v14 = vand.u32 2147483647, %v58_v10  ;;  %v71_v15 = vand.u32 2147483647, %v300_v11  ;;  %p235_p5 = por %p234_p4, %p233_p3 }
  0x2c   :  { %v72_v16 = vsub.f32 0.0, %v68_v12  ;;  %v61_v40 = vmax.f32 %v57_v9, 0.0  ;;  %v62_v43 = vmax.f32 %v58_v10, 0.0  ;;  %v63_v45 = vmax.f32 %v300_v11, 0.0 }
  0x2d   :  { %v73_v17 = vsub.f32 0.0, %v69_v13  ;;  %v74_v18 = vsub.f32 0.0, %v70_v14  ;;  %v75_v19 = vsub.f32 0.0, %v71_v15  ;;  %v64_v49 = vsub.f32 %v60_v37, %v56_v8  ;;  %p236_p6 = pnand %p235_p5, %p229_p2 }
  0x2e   :  { %v76_v20 = vmul.f32 1.442695, %v72_v16  ;;  %v65_v54 = vsub.f32 %v61_v40, %v57_v9  ;;  %v66_v59 = vsub.f32 %v62_v43, %v58_v10  ;;  %v67_v1 = vsub.f32 %v63_v45, %v300_v11 }
  0x2f   :  { %v78_v21 = vmul.f32 1.442695, %v73_v17  ;;  %v80_v22 = vmul.f32 1.442695, %v74_v18  ;;  %v82_v23 = vmul.f32 1.442695, %v75_v19 }
  0x30   :  { %168 = vpow2.f32 %v76_v20 }
  0x31   :  { %170 = vpow2.f32 %v78_v21 }
  0x32   :  { %172 = vpow2.f32 %v80_v22 }
  0x33   :  { %174 = vpow2.f32 %v82_v23 }
  0x3a   :  { %v169_v24 = vpop.eup %168 }
  0x3b   :  { %v171_v25 = vpop.eup %170  ;;  %v84_v26 = vadd.f32 1.0, %v169_v24  ;;  %v87_v31 = vmul.f32 -0.5, %v169_v24  ;;  %v90_v38 = vand.u32 2147483647, %v169_v24 }
  0x3c   :  { %v173_v27 = vpop.eup %172  ;;  %v93_v28 = vadd.f32 1.0, %v171_v25  ;;  %v96_v32 = vmul.f32 -0.5, %v171_v25  ;;  %v99_v41 = vand.u32 2147483647, %v171_v25 }
  0x3d   :  { %v175_v29 = vpop.eup %174  ;;  %176 = vlog2.f32 %v84_v26  ;;  %v102_v30 = vadd.f32 1.0, %v173_v27  ;;  %v105_v34 = vmul.f32 -0.5, %v173_v27  ;;  %v88_v35 = vadd.f32 1.0, %v87_v31 }
  0x3e   :  { %178 = vlog2.f32 %v93_v28  ;;  %v111_v33 = vadd.f32 1.0, %v175_v29  ;;  %v114_v36 = vmul.f32 -0.5, %v175_v29  ;;  %v97_v39 = vadd.f32 1.0, %v96_v32 }
  0x3f   :  { %180 = vlog2.f32 %v102_v30  ;;  %v106_v42 = vadd.f32 1.0, %v105_v34  ;;  %v108_v44 = vand.u32 2147483647, %v173_v27  ;;  %v89_v46 = vmul.f32 %v169_v24, %v88_v35 }
  0x40   :  { %182 = vlog2.f32 %v111_v33  ;;  %v115_v47 = vadd.f32 1.0, %v114_v36  ;;  %vm304_vm0 = vcmp.lt.f32.partialorder %v90_v38, 0.0004427343  ;;  %v98_v51 = vmul.f32 %v171_v25, %v97_v39 }
  0x41   :  { %v117_v52 = vand.u32 2147483647, %v175_v29  ;;  %vm308_vm1 = vcmp.lt.f32.partialorder %v99_v41, 0.0004427343  ;;  %v107_v57 = vmul.f32 %v173_v27, %v106_v42  ;;  %vm109_vm2 = vcmp.lt.f32.partialorder %v108_v44, 0.0004427343 }
  0x42   :  { %v116_v63 = vmul.f32 %v175_v29, %v115_v47 }
  0x43   :  { %vm118_vm3 = vcmp.lt.f32.partialorder %v117_v52, 0.0004427343 }
  0x47   :  { %v177_v48 = vpop.eup %176 }
  0x48   :  { %v179_v53 = vpop.eup %178  ;;  %v86_v55 = vmul.f32 0.6931472, %v177_v48 }
  0x49   :  { %v181_v58 = vpop.eup %180  ;;  %v95_v60 = vmul.f32 0.6931472, %v179_v53 }
  0x4a   :  { %v92_v61 = vsel %vm304_vm0, %v89_v46, %v86_v55  ;;  %v104_v62 = vmul.f32 0.6931472, %v181_v58  ;;  %v183_v0 = vpop.eup %182 }
  0x4b   :  { %v101_v2 = vsel %vm308_vm1, %v98_v51, %v95_v60  ;;  %v120_v3 = vadd.f32 %v92_v61, %v64_v49  ;;  %v113_v5 = vmul.f32 0.6931472, %v183_v0 }
  0x4c   :  { %v110_v4 = vsel %vm109_vm2, %v107_v57, %v104_v62  ;;  %v121_v6 = vadd.f32 %v101_v2, %v65_v54 }
  0x4d   :  { %v122_v7 = vadd.f32 %v110_v4, %v66_v59  ;;  %v119_v8 = vsel %vm118_vm3, %v116_v63, %v113_v5 }
  0x4e   :  { %v143_v9 = vadd.f32 %v121_v6, %v120_v3  ;;  %v123_v10 = vadd.f32 %v119_v8, %v67_v1 }
  0x50   :  { %v144_v12 = vadd.f32 %v143_v9, %v122_v7 }
  0x52   :  { %v145_v13 = vadd.f32 %v144_v12, %v123_v10 }
  0x54   :  { %146 = vst [vmem:[#allocation8] sm:$0xff] %v145_v13 }
  0x55   :  { %239 = shalt.err (!%p236_p6)
}
  0x56   :  { %s240_s10 = scalar_lea.hbm %s331_s2, 128 }
  0x57   :  { %p241_p7 = scmp.ne.s32.totalorder %s331_s2, %s240_s10  ;;  %p244_p8 = scmp.lt.u32.totalorder %s240_s10, %s331_s2 }
  0x59   :  { %p246_p9 = pnand %p244_p8, %p241_p7 }
  0x5b   :  { %249 = shalt.err (!%p246_p9)
}
  0x5c   :  { %156 = dma.vmem_to_hbm [thread:$0]  %s154_s6, 128, %s331_s2, [#allocation5]  }
  0x5d   :  { %254 = dma.done.wait [#allocation5], 128  }
  0x5e   :  { %255 = vsyncadd [#allocation5], 4294967168 }
  0x5f   :  { %160 = vsyncpa [#allocation4], 1 }
  0x60   :  { %161 = vsyncpa [#allocation7], 1 }
  0x61   :  { %162 = vsyncpa [#allocation5], 1 }

</bundles_post_ra>
